<compile_context>
chip_gen: v6e
topology: v6e:2x2x1
jax: 0.10.0
libtpu: 0.0.40
codegen_flags: <defaults>
</compile_context>

<pallas_src>
import functools

import jax
import jax.numpy as jnp
import numpy as np
from jax.experimental import pallas as pl
from jax.experimental.pallas import tpu as pltpu

EPS = 1e-5
K = 3          # Conv1d kernel_size
LANE = 128     # TPU lane width
SUB = 8        # TPU sublane count (32-bit)


def _round_up(x, m):
    return (x + m - 1) // m * m


def _pad_lanes(v, width):
    """Zero-pad the last (lane) axis of a 2-D value up to `width` (no-op if equal)."""
    cur = v.shape[-1]
    if cur == width:
        return v
    zeros = jnp.zeros(v.shape[:-1] + (width - cur,), v.dtype)
    return jnp.concatenate([v, zeros], axis=-1)


# --------------------------------- kernels ---------------------------------

def _conv1_kernel(x_ref, w_ref, y_ref, st_ref, *, dil, L):
    """Conv #1 as K accumulated per-tap dots + per-tile BN1 partial statistics.

    x_ref : (Bt, La, Cin)       mxu dtype; rows [2*dil, 2*dil+L) hold x, zeros elsewhere
    w_ref : (K, Cinp, Coutp)    mxu dtype; per-tap weight slabs (lane-padded channels)
    y_ref : (Bt, Lp8, Coutp)    pre-BN conv1 output; rows outside [dil, dil+L) are zero
    st_ref: (1, 2, Coutp) f32   [sum, sum_sq] over this tile's Bt*L valid rows
    """
    Bt, _, Cin = x_ref.shape
    Lp8 = y_ref.shape[1]
    Cinp, Coutp = w_ref.shape[1], w_ref.shape[2]

    x = x_ref[...]                                         # already in the MXU dtype
    acc = None
    for k in range(K):                                     # 3 accumulated MXU dots
        lhs = x[:, k * dil:k * dil + Lp8, :].reshape(Bt * Lp8, Cin)
        p = jnp.dot(_pad_lanes(lhs, Cinp), w_ref[k],
                    preferred_element_type=jnp.float32)
        acc = p if acc is None else acc + p

    y = acc.reshape(Bt, Lp8, Coutp)
    r = jax.lax.broadcasted_iota(jnp.int32, y.shape, 1)
    y = jnp.where((r >= dil) & (r < dil + L), y, 0.0)      # zero halo + tail-pad rows
    y_ref[...] = y.astype(y_ref.dtype)

    yf = y.reshape(Bt * Lp8, Coutp)
    # TODO(synk): single-pass sum/sum_sq in f32 can lose precision for very large N*L;
    #             switch to a compensated / two-pass reduction if that regime matters.
    st_ref[0] = jnp.concatenate(
        [jnp.sum(yf, axis=0, keepdims=True),
         jnp.sum(yf * yf, axis=0, keepdims=True)], axis=0)


def _bn_relu_conv2_kernel(y1_ref, s1_ref, b1_ref, w_ref, y2_ref, st_ref, *, dil, L):
    """BN1 (fused scale/shift) + ReLU + conv #2 + per-tile BN2 partial statistics.

    y1_ref: (Bt, Lp8, Coutp)    pre-BN conv1 output (zero halo rows)
    s1/b1 : (1, Coutp) f32      gamma1*rsqrt(var1+eps) / beta1 - mean1*scale1
    w_ref : (K, Coutp, Coutp)   per-tap conv2 weight slabs
    y2_ref: (Bt, L8, Coutp)     pre-BN conv2 output; rows >= L are zero
    st_ref: (1, 2, Coutp) f32
    """
    Bt, _, Coutp = y1_ref.shape
    L8 = y2_ref.shape[1]

    s1 = s1_ref[...].reshape(1, 1, Coutp)
    b1 = b1_ref[...].reshape(1, 1, Coutp)
    h = jnp.maximum(y1_ref[...].astype(jnp.float32) * s1 + b1, 0.0)
    # BN shifts the zero halo to a nonzero constant; restore the exact zero padding
    # conv #2 needs (also zeroes the tail-pad rows).
    r = jax.lax.broadcasted_iota(jnp.int32, h.shape, 1)
    h = jnp.where((r >= dil) & (r < dil + L), h, 0.0)
    hm = h.astype(w_ref.dtype)                             # cast once, before tap slices

    acc = None
    for k in range(K):
        lhs = hm[:, k * dil:k * dil + L8, :].reshape(Bt * L8, Coutp)
        p = jnp.dot(lhs, w_ref[k], preferred_element_type=jnp.float32)
        acc = p if acc is None else acc + p

    y2 = acc.reshape(Bt, L8, Coutp)
    r2 = jax.lax.broadcasted_iota(jnp.int32, y2.shape, 1)
    y2 = jnp.where(r2 < L, y2, 0.0)                        # zero tail-pad rows
    y2_ref[...] = y2.astype(y2_ref.dtype)

    yf = y2.reshape(Bt * L8, Coutp)
    st_ref[0] = jnp.concatenate(
        [jnp.sum(yf, axis=0, keepdims=True),
         jnp.sum(yf * yf, axis=0, keepdims=True)], axis=0)


def _bn_relu_out_kernel(y2_ref, s2_ref, b2_ref, o_ref, *, L, cout):
    """BN2 + ReLU, emitted directly in the final PyTorch (N, Cout, L) layout.

    y2_ref: (Bt, L8, Coutp)     pre-BN conv2 output
    o_ref : (Bt, cout, L) f32   final output block (unpadded channels, L on lanes)
    """
    Bt, _, Coutp = y2_ref.shape
    s2 = s2_ref[...].reshape(1, 1, Coutp)
    b2 = b2_ref[...].reshape(1, 1, Coutp)
    o = jnp.maximum(y2_ref[...].astype(jnp.float32) * s2 + b2, 0.0)   # (Bt, L8, Coutp)
    # Per-element 2-D transpose on the aligned (L8, Coutp) tile rides the XLU slot;
    # slicing afterwards strips the channel/row padding so only real data hits HBM.
    for b in range(Bt):
        o_ref[b] = jnp.transpose(o[b])[:cout, :L]


# --------------------------------- wrapper ---------------------------------

def _vmem_capacity_bytes():
    try:
        return int(pltpu.get_tpu_info().vmem_capacity_bytes)
    except Exception:
        return 64 << 20            # conservative fallback (v7x per-TC VMEM)


def _vmem_limit(blocks, cap):
    """blocks: iterable of (shape, dtype, n_buffers) for one grid step."""
    need = sum(int(np.prod(s)) * jnp.dtype(dt).itemsize * nb for s, dt, nb in blocks)
    need += 4 << 20                                        # Mosaic internal headroom
    return int(min(max(need, 32 << 20), int(0.85 * cap)))  # gen-aware clamp w/ headroom


def _act_spec(shape, index_map):
    """Activation-input BlockSpec with 3-deep pipelining when supported."""
    try:
        return pl.BlockSpec(shape, index_map, pipeline_mode=pl.Buffered(3))
    except Exception:  # older jax without pipeline_mode / Buffered
        return pl.BlockSpec(shape, index_map)


def _bn_scale_shift(partial_stats, gamma_p, beta_p, count):
    """Finalize batch statistics into fused per-channel scale/shift (tiny, XLA-side)."""
    tot = jnp.sum(partial_stats.astype(jnp.float32), axis=0)        # (2, Cp)
    mean = tot[0] / count
    var = jnp.maximum(tot[1] / count - mean * mean, 0.0)            # biased variance
    scale = gamma_p * jax.lax.rsqrt(var + EPS)
    shift = beta_p - mean * scale
    return scale.reshape(1, -1), shift.reshape(1, -1)


def double_conv1d(x_ncl, params, dilation=1, mxu_dtype=jnp.bfloat16):
    """x_ncl: (N, Cin, L) float32 (PyTorch NCL). Returns (N, Cout, L) float32."""
    N, Cin, L = x_ncl.shape
    Cout = params["w1"].shape[0]
    d = dilation
    act_dtype = mxu_dtype
    sz = jnp.dtype(mxu_dtype).itemsize

    # Sublane-aligned row layouts (so in-kernel flattens are layout-free, incl. bf16).
    row_align = max(SUB, (SUB * 4) // sz)
    L8 = _round_up(L, row_align)            # stored rows of the conv2 output
    Lp8 = _round_up(L8 + 2 * d, row_align)  # stored rows of the conv1 output (d halo)
    La = Lp8 + 2 * d                        # stored rows of the conv1 input (2d halo)
    Cinp = _round_up(Cin, LANE)
    Coutp = _round_up(Cout, LANE)

    # ---- generation-aware VMEM budget -> batch tile (divisor of N, grid >= 2) ----
    cap = _vmem_capacity_bytes()
    w_bytes = (K * Cinp * Coutp + K * Coutp * Coutp) * sz
    e1 = La * Cin * sz + Lp8 * Coutp * sz
    e2 = Lp8 * Coutp * sz + L8 * Coutp * sz
    e3 = L8 * Coutp * sz + Cout * L * 4
    per_elem = max(e1, e2, e3)
    budget = max(int(0.6 * cap) - 2 * w_bytes, 1 << 20)
    bt_cap = max(1, budget // (4 * per_elem))
    Bt = 1
    for bt in range(1, N + 1):
        if N % bt == 0 and bt <= bt_cap and (N // bt >= 2 or N == 1):
            Bt = bt                          # largest divisor keeping >=2 grid steps
    Ntiles = N // Bt

    # ---- ingress (XLA): NCL -> NLC + length halo, MXU dtype, REAL Cin lanes ----
    # Channel padding happens in-kernel, so no 32x-inflated f32 x_pad lands in HBM.
    # TODO(synk): fuse the NCL->NLC transpose into K1 for very large Cin.
    x_nlc = jnp.transpose(x_ncl, (0, 2, 1)).astype(mxu_dtype)
    x_pad = jnp.pad(x_nlc, ((0, 0), (2 * d, La - L - 2 * d), (0, 0)))

    # PyTorch conv weight (Cout, Cin, K) -> per-tap (K, Cin_pad, Cout_pad) slabs.
    def fold_w(w, ci, cip):
        wf = jnp.zeros((K, cip, Coutp), jnp.float32)
        wf = wf.at[:, :ci, :Cout].set(jnp.transpose(w, (2, 1, 0)).astype(jnp.float32))
        return wf.astype(mxu_dtype)

    w1 = fold_w(params["w1"], Cin, Cinp)
    w2 = fold_w(params["w2"], Cout, Coutp)
    # Conv biases b1/b2 intentionally unused: training-mode BN subtracts the batch
    # mean right after each conv, so a per-channel constant cancels exactly.
    pad_c = lambda v: jnp.zeros((Coutp,), jnp.float32).at[:Cout].set(v.astype(jnp.float32))
    g1, be1 = pad_c(params["g1"]), pad_c(params["be1"])
    g2, be2 = pad_c(params["g2"]), pad_c(params["be2"])

    par = ("parallel",)

    # ---- K1: conv1 + partial BN1 stats ----
    cp1 = pltpu.CompilerParams(
        dimension_semantics=par,
        vmem_limit_bytes=_vmem_limit(
            [((Bt, La, Cin), mxu_dtype, 2), ((K, Cinp, Coutp), mxu_dtype, 2),
             ((Bt, Lp8, Coutp), act_dtype, 2), ((1, 2, Coutp), jnp.float32, 2)], cap))
    y1, st1 = pl.pallas_call(
        functools.partial(_conv1_kernel, dil=d, L=L),
        grid=(Ntiles,),
        in_specs=[pl.BlockSpec((Bt, La, Cin), lambda n: (n, 0, 0)),
                  pl.BlockSpec((K, Cinp, Coutp), lambda n: (0, 0, 0))],
        out_specs=(pl.BlockSpec((Bt, Lp8, Coutp), lambda n: (n, 0, 0)),
                   pl.BlockSpec((1, 2, Coutp), lambda n: (n, 0, 0))),
        out_shape=(jax.ShapeDtypeStruct((N, Lp8, Coutp), act_dtype),
                   jax.ShapeDtypeStruct((Ntiles, 2, Coutp), jnp.float32)),
        compiler_params=cp1,
    )(x_pad, w1)
    s1, b1 = _bn_scale_shift(st1, g1, be1, N * L)

    # ---- K2: BN1 + ReLU + conv2 + partial BN2 stats ----
    cp2 = pltpu.CompilerParams(
        dimension_semantics=par,
        vmem_limit_bytes=_vmem_limit(
            [((Bt, Lp8, Coutp), act_dtype, 3), ((1, Coutp), jnp.float32, 4),
             ((K, Coutp, Coutp), mxu_dtype, 2), ((Bt, L8, Coutp), act_dtype, 2),
             ((1, 2, Coutp), jnp.float32, 2)], cap))
    y2, st2 = pl.pallas_call(
        functools.partial(_bn_relu_conv2_kernel, dil=d, L=L),
        grid=(Ntiles,),
        in_specs=[_act_spec((Bt, Lp8, Coutp), lambda n: (n, 0, 0)),
                  pl.BlockSpec((1, Coutp), lambda n: (0, 0)),
                  pl.BlockSpec((1, Coutp), lambda n: (0, 0)),
                  pl.BlockSpec((K, Coutp, Coutp), lambda n: (0, 0, 0))],
        out_specs=(pl.BlockSpec((Bt, L8, Coutp), lambda n: (n, 0, 0)),
                   pl.BlockSpec((1, 2, Coutp), lambda n: (n, 0, 0))),
        out_shape=(jax.ShapeDtypeStruct((N, L8, Coutp), act_dtype),
                   jax.ShapeDtypeStruct((Ntiles, 2, Coutp), jnp.float32)),
        compiler_params=cp2,
    )(y1, s1, b1, w2)
    s2, b2 = _bn_scale_shift(st2, g2, be2, N * L)

    # ---- K3: BN2 + ReLU, final (N, Cout, L) layout written in-kernel ----
    cp3 = pltpu.CompilerParams(
        dimension_semantics=par,
        vmem_limit_bytes=_vmem_limit(
            [((Bt, L8, Coutp), act_dtype, 3), ((1, Coutp), jnp.float32, 4),
             ((Bt, Cout, L), jnp.float32, 2)], cap))
    out = pl.pallas_call(
        functools.partial(_bn_relu_out_kernel, L=L, cout=Cout),
        grid=(Ntiles,),
        in_specs=[_act_spec((Bt, L8, Coutp), lambda n: (n, 0, 0)),
                  pl.BlockSpec((1, Coutp), lambda n: (0, 0)),
                  pl.BlockSpec((1, Coutp), lambda n: (0, 0))],
        out_specs=pl.BlockSpec((Bt, Cout, L), lambda n: (n, 0, 0)),
        out_shape=jax.ShapeDtypeStruct((N, Cout, L), jnp.float32),
        compiler_params=cp3,
    )(y2, s2, b2)
    return out


# ------------- pure-JAX reference (PyTorch semantics, NCL, train-mode BN) -------------
def _ref_forward(x_ncl, params, dil):
    def conv(x, w, b):
        y = jax.lax.conv_general_dilated(
            x, w, window_strides=(1,), padding=[(dil, dil)],
            rhs_dilation=(dil,), dimension_numbers=("NCH", "OIH", "NCH"))
        return y + b[None, :, None]

    def bn(x, g, be):
        mean = x.mean(axis=(0, 2), keepdims=True)
        var = ((x - mean) ** 2).mean(axis=(0, 2), keepdims=True)
        return (x - mean) * jax.lax.rsqrt(var + EPS) * g[None, :, None] + be[None, :, None]

    h = jnp.maximum(bn(conv(x_ncl, params["w1"], params["b1"]), params["g1"], params["be1"]), 0.0)
    h = jnp.maximum(bn(conv(h, params["w2"], params["b2"]), params["g2"], params["be2"]), 0.0)
    return h


if __name__ == "__main__":
    B, Cin, Cout, L, dil = 2, 4, 8, 16, 2

    key = jax.random.PRNGKey(0)
    ks = jax.random.split(key, 9)
    x = jax.random.normal(ks[0], (B, Cin, L), jnp.float32)
    params = dict(
        w1=0.3 * jax.random.normal(ks[1], (Cout, Cin, K), jnp.float32),
        b1=0.1 * jax.random.normal(ks[2], (Cout,), jnp.float32),
        g1=1.0 + 0.1 * jax.random.normal(ks[3], (Cout,), jnp.float32),
        be1=0.1 * jax.random.normal(ks[4], (Cout,), jnp.float32),
        w2=0.3 * jax.random.normal(ks[5], (Cout, Cout, K), jnp.float32),
        b2=0.1 * jax.random.normal(ks[6], (Cout,), jnp.float32),
        g2=1.0 + 0.1 * jax.random.normal(ks[7], (Cout,), jnp.float32),
        be2=0.1 * jax.random.normal(ks[8], (Cout,), jnp.float32),
    )

    ref = jax.block_until_ready(_ref_forward(x, params, dil))

    # exact path: f32 MXU operands / f32 intermediates -> tight tolerance
    out_f32 = jax.block_until_ready(
        double_conv1d(x, params, dilation=dil, mxu_dtype=jnp.float32))
    assert out_f32.shape == (B, Cout, L), out_f32.shape
    np.testing.assert_allclose(np.asarray(out_f32), np.asarray(ref), rtol=1e-4, atol=1e-4)

    # perf path (default): bf16 MXU operands + bf16 intermediates, f32 BN/stat math
    out_bf16 = jax.block_until_ready(
        double_conv1d(x, params, dilation=dil, mxu_dtype=jnp.bfloat16))
    assert out_bf16.shape == (B, Cout, L), out_bf16.shape
    np.testing.assert_allclose(np.asarray(out_bf16), np.asarray(ref), rtol=5e-2, atol=5e-2)

    print("KERNEL_OK")
</pallas_src>

<mosaic_0001>
module attributes {stable_mosaic.version = 11 : i64} {
  func.func @_conv1_kernel(%arg0: i32, %arg1: memref<1x28x4xf32, #tpu.memory_space<vmem>>, %arg2: memref<3x128x128xf32, #tpu.memory_space<vmem>>, %arg3: memref<1x24x128xf32, #tpu.memory_space<vmem>>, %arg4: memref<1x2x128xf32, #tpu.memory_space<vmem>>) attributes {dimension_semantics = [#tpu.dimension_semantics<parallel>], iteration_bounds = array<i64: 2>, scalar_prefetch = 0 : i64, scratch_operands = 0 : i64, tpu.core_type = #tpu.core_type<tc>, window_params = [{transform_indices = @transform_0, window_bounds = array<i64: 1, 28, 4>}, {pipeline_mode = #tpu.pipeline_mode<synchronous>, transform_indices = @transform_1, window_bounds = array<i64: 3, 128, 128>}, {transform_indices = @transform_2, window_bounds = array<i64: 1, 24, 128>}, {transform_indices = @transform_3, window_bounds = array<i64: 1, 2, 128>}]} {
    %c0 = arith.constant 0 : index
    %c0_0 = arith.constant 0 : index
    %c0_1 = arith.constant 0 : index
    %0 = vector.load %arg1[%c0, %c0_0, %c0_1] : memref<1x28x4xf32, #tpu.memory_space<vmem>>, vector<1x28x4xf32>
    %1 = vector.extract_strided_slice %0 {offsets = [0, 0, 0], sizes = [1, 24, 4], strides = [1, 1, 1]} : vector<1x28x4xf32> to vector<1x24x4xf32>
    %2 = vector.shape_cast %1 : vector<1x24x4xf32> to vector<24x4xf32>
    %cst = arith.constant 0.000000e+00 : f32
    %3 = vector.broadcast %cst : f32 to vector<24x124xf32>
    %4 = tpu.concatenate %2, %3 in 1 : vector<24x4xf32>, vector<24x124xf32> -> vector<24x128xf32>
    %c0_2 = arith.constant 0 : index
    %c0_3 = arith.constant 0 : index
    %c0_4 = arith.constant 0 : index
    %5 = vector.load %arg2[%c0_2, %c0_3, %c0_4] : memref<3x128x128xf32, #tpu.memory_space<vmem>>, vector<1x128x128xf32>
    %6 = vector.shape_cast %5 : vector<1x128x128xf32> to vector<128x128xf32>
    %cst_5 = arith.constant dense<0.000000e+00> : vector<24x128xf32>
    %7 = tpu.matmul %4, %6, %cst_5 {dimension_numbers = #tpu.dot_dimension_numbers<[1], [0], [0], [1], [0, 0, 1, 1], [], []>} : vector<24x128xf32>, vector<128x128xf32>, vector<24x128xf32> -> vector<24x128xf32>
    %8 = vector.extract_strided_slice %0 {offsets = [0, 2, 0], sizes = [1, 24, 4], strides = [1, 1, 1]} : vector<1x28x4xf32> to vector<1x24x4xf32>
    %9 = vector.shape_cast %8 : vector<1x24x4xf32> to vector<24x4xf32>
    %cst_6 = arith.constant 0.000000e+00 : f32
    %10 = vector.broadcast %cst_6 : f32 to vector<24x124xf32>
    %11 = tpu.concatenate %9, %10 in 1 : vector<24x4xf32>, vector<24x124xf32> -> vector<24x128xf32>
    %c1 = arith.constant 1 : index
    %c0_7 = arith.constant 0 : index
    %c0_8 = arith.constant 0 : index
    %12 = vector.load %arg2[%c1, %c0_7, %c0_8] : memref<3x128x128xf32, #tpu.memory_space<vmem>>, vector<1x128x128xf32>
    %13 = vector.shape_cast %12 : vector<1x128x128xf32> to vector<128x128xf32>
    %cst_9 = arith.constant dense<0.000000e+00> : vector<24x128xf32>
    %14 = tpu.matmul %11, %13, %cst_9 {dimension_numbers = #tpu.dot_dimension_numbers<[1], [0], [0], [1], [0, 0, 1, 1], [], []>} : vector<24x128xf32>, vector<128x128xf32>, vector<24x128xf32> -> vector<24x128xf32>
    %15 = arith.addf %7, %14 : vector<24x128xf32>
    %16 = vector.extract_strided_slice %0 {offsets = [0, 4, 0], sizes = [1, 24, 4], strides = [1, 1, 1]} : vector<1x28x4xf32> to vector<1x24x4xf32>
    %17 = vector.shape_cast %16 : vector<1x24x4xf32> to vector<24x4xf32>
    %cst_10 = arith.constant 0.000000e+00 : f32
    %18 = vector.broadcast %cst_10 : f32 to vector<24x124xf32>
    %19 = tpu.concatenate %17, %18 in 1 : vector<24x4xf32>, vector<24x124xf32> -> vector<24x128xf32>
    %c2 = arith.constant 2 : index
    %c0_11 = arith.constant 0 : index
    %c0_12 = arith.constant 0 : index
    %20 = vector.load %arg2[%c2, %c0_11, %c0_12] : memref<3x128x128xf32, #tpu.memory_space<vmem>>, vector<1x128x128xf32>
    %21 = vector.shape_cast %20 : vector<1x128x128xf32> to vector<128x128xf32>
    %cst_13 = arith.constant dense<0.000000e+00> : vector<24x128xf32>
    %22 = tpu.matmul %19, %21, %cst_13 {dimension_numbers = #tpu.dot_dimension_numbers<[1], [0], [0], [1], [0, 0, 1, 1], [], []>} : vector<24x128xf32>, vector<128x128xf32>, vector<24x128xf32> -> vector<24x128xf32>
    %23 = arith.addf %15, %22 : vector<24x128xf32>
    %24 = vector.shape_cast %23 : vector<24x128xf32> to vector<1x24x128xf32>
    %25 = tpu.iota {dimensions = array<i32: 1>} : vector<1x24x128xi32>
    %c2_i32 = arith.constant 2 : i32
    %26 = vector.broadcast %c2_i32 : i32 to vector<1x24x128xi32>
    %27 = arith.cmpi sge, %25, %26 : vector<1x24x128xi32>
    %c18_i32 = arith.constant 18 : i32
    %28 = vector.broadcast %c18_i32 : i32 to vector<1x24x128xi32>
    %29 = arith.cmpi slt, %25, %28 : vector<1x24x128xi32>
    %30 = arith.andi %27, %29 : vector<1x24x128xi1>
    %cst_14 = arith.constant 0.000000e+00 : f32
    %31 = vector.broadcast %cst_14 : f32 to vector<1x24x128xf32>
    %32 = arith.select %30, %24, %31 : vector<1x24x128xi1>, vector<1x24x128xf32>
    %c0_15 = arith.constant 0 : index
    %c0_16 = arith.constant 0 : index
    %c0_17 = arith.constant 0 : index
    %33 = vector.load %arg3[%c0_15, %c0_16, %c0_17] : memref<1x24x128xf32, #tpu.memory_space<vmem>>, vector<1x24x128xf32>
    tpu.vector_store %arg3[%c0_15, %c0_16, %c0_17], %32 {strides = array<i32>} : memref<1x24x128xf32, #tpu.memory_space<vmem>>, vector<1x24x128xf32>,
    %34 = vector.shape_cast %32 : vector<1x24x128xf32> to vector<24x128xf32>
    %cst_18 = arith.constant dense<0.000000e+00> : vector<128xf32>
    %35 = vector.multi_reduction <add>, %34, %cst_18 [0] : vector<24x128xf32> to vector<128xf32>
    %36 = vector.shape_cast %35 : vector<128xf32> to vector<1x128xf32>
    %37 = arith.mulf %34, %34 : vector<24x128xf32>
    %cst_19 = arith.constant dense<0.000000e+00> : vector<128xf32>
    %38 = vector.multi_reduction <add>, %37, %cst_19 [0] : vector<24x128xf32> to vector<128xf32>
    %39 = vector.shape_cast %38 : vector<128xf32> to vector<1x128xf32>
    %40 = tpu.concatenate %36, %39 in 0 : vector<1x128xf32>, vector<1x128xf32> -> vector<2x128xf32>
    %c0_20 = arith.constant 0 : index
    %c0_21 = arith.constant 0 : index
    %c0_22 = arith.constant 0 : index
    %41 = vector.load %arg4[%c0_20, %c0_21, %c0_22] : memref<1x2x128xf32, #tpu.memory_space<vmem>>, vector<1x2x128xf32>
    %42 = vector.shape_cast %41 : vector<1x2x128xf32> to vector<2x128xf32>
    %43 = vector.shape_cast %40 : vector<2x128xf32> to vector<1x2x128xf32>
    tpu.vector_store %arg4[%c0_20, %c0_21, %c0_22], %43 {strides = array<i32>} : memref<1x2x128xf32, #tpu.memory_space<vmem>>, vector<1x2x128xf32>,
    return
  }
  func.func @transform_0(%arg0: i32) -> (i32, i32, i32) {
    %c0_i32 = arith.constant 0 : i32
    %c0_i32_0 = arith.constant 0 : i32
    %c0_i32_1 = arith.constant 0 : i32
    return %arg0, %c0_i32, %c0_i32_0 : i32, i32, i32
  }
  func.func @transform_1(%arg0: i32) -> (i32, i32, i32) {
    %c0_i32 = arith.constant 0 : i32
    %c0_i32_0 = arith.constant 0 : i32
    %c0_i32_1 = arith.constant 0 : i32
    %c0_i32_2 = arith.constant 0 : i32
    return %c0_i32, %c0_i32_0, %c0_i32_1 : i32, i32, i32
  }
  func.func @transform_2(%arg0: i32) -> (i32, i32, i32) {
    %c0_i32 = arith.constant 0 : i32
    %c0_i32_0 = arith.constant 0 : i32
    %c0_i32_1 = arith.constant 0 : i32
    return %arg0, %c0_i32, %c0_i32_0 : i32, i32, i32
  }
  func.func @transform_3(%arg0: i32) -> (i32, i32, i32) {
    %c0_i32 = arith.constant 0 : i32
    %c0_i32_0 = arith.constant 0 : i32
    %c0_i32_1 = arith.constant 0 : i32
    return %arg0, %c0_i32, %c0_i32_0 : i32, i32, i32
  }
}

</mosaic_0001>

<bundles_post_ra>
// kernel: tpu_custom_call.1
= control target key start
LH: loop header
LB: loop body
LE: loop exit
PB: predicated region body
PF: predicated region fallthrough
CT: control target
= control target key end

     0   :  { %9 = vsyncpa [#allocation3], 0  ;;  %s1414_s0 = inlined_call_operand.vmem [shape: f32[2,28,4], index: 0, kind: input, shape index: {}]   ;;  %s1415_s1 = inlined_call_operand.hbm [shape: f32[3,128,128], index: 1, kind: input, shape index: {}]   ;;  %s1416_s2 = inlined_call_operand.hbm [shape: f32[2,24,128], index: 2, kind: output, shape index: {0}]   ;;  %s1417_s3 = inlined_call_operand.hbm [shape: f32[2,2,128], index: 3, kind: output, shape index: {1}]  }
   0x1   :  { %10 = vsyncpa [#allocation4], 0 }
   0x2   :  { %12 = vsyncpa [#allocation4 + $0x1], 0 }
   0x3   :  { %13 = vsyncpa [#allocation7], 0 }
   0x4   :  { %15 = vsyncpa [#allocation7 + $0x1], 0  ;;  %s1146_s12 = smov 0   ;;  %s1148_s13 = smov 0  }
   0x5   :  { %s1150_s14 = smov 0   ;;  %s1152_s15 = smov 0  }
   0x6 LB: > { %s1167_s16 = sadd.s32 4294967295, %s1115_s15   ;;  %s702_s17 = sadd.s32 4294967294, %s1115_s15   ;;  %s1115_s15 = sphi %s1152_s15, %s1425_s15   ;;  %s1111_s14 = sphi %s1150_s14, %s1424_s14   ;;  %s1107_s13 = sphi %s1148_s13, %s1423_s13   ;;  %s1103_s12 = sphi %s1146_s12, %s1422_s12  }
   0x7   : > { %s1171_s18 = sadd.s32 1, %s1115_s15   ;;  %s75_s19 = sadd.s32 1, %s1111_s14 }
   0x8   : > { %s72_s20 = ssub.s32 %s1115_s15, %s1171_s18  ;;  %p85_p0 = scmp.ne.s32.totalorder %s1111_s14, %s1107_s13 }
   0x9   : > { %p73_p1 = scmp.eq.s32.totalorder %s72_s20, 0  ;;  %p86_p2 = scmp.eq.s32.totalorder %s1167_s16, 1 }
   0xa   : > { %p91_p3 = scmp.ne.s32.totalorder %s1107_s13, %s1103_s12  ;;  %p92_p4 = scmp.eq.s32.totalorder %s702_s17, 1 }
   0xb   : > { %s1182_s21 = scalar_select %p73_p1, %s1111_s14, %s75_s19  }
   0xc   : > { %p1184_p5 = por %p86_p2, %p85_p0  ;;  %p1188_p6 = por %p92_p4, %p91_p3 }
   0xd   : > { %p703_p7 = scmp.ge.s32.totalorder %s1115_s15, 1  ;;  %p125_p8 = scmp.lt.s32.totalorder %s1115_s15, 3 }
   0xe   : > { %s1419_s23 = scalar_select %p1188_p6, 1, 0 }
   0xf   : > { %p953_p9 = scmp.eq.s32.totalorder %s1167_s16, 0  ;;  %p1195_p10 = pnand %p703_p7, %p125_p8 }
  0x10   : > { %s1117_s25 = smov [#allocation2]  }
  0x11   : > { %s137_s26 = sshll.u32 %s1117_s25, 4  ;;  %p942_p11 = pneg %p1195_p10  ;;  %s138_s26 = int_to_ptr.vmem [resolvable:$true] %s137_s26 }
  0x12   : > { %s1006_s27 = scalar_lea.vmem %s138_s26, 6144  ;;  %p1014_p3 = scmp.lt.s32.totalorder %s138_s26, %s138_s26 }
  0x13   : > { %p943_p12 = pnand %p953_p9, %p942_p11  ;;  %p1007_p0 = scmp.ne.s32.totalorder %s138_s26, %s1006_s27 }
  0x14   : > { %p1015_p4 = scmp.lt.s32.totalorder %s1006_s27, %s1006_s27 }
  0x15   : > { %p997_p13 = pneg %p943_p12 }
  0x16   : > { %p1016_p6 = por %p1015_p4, %p1014_p3 }
  0x17   : > { %p1009_p1 = pnand %p1007_p0, %p997_p13 }
  0x19   : > { %p1010_p2 = pneg %p1009_p1 }
  0x1b   : > { %p1017_p7 = pnand %p1016_p6, %p1010_p2 }
  0x1d   : > { %1020 = shalt.err (!%p1017_p7)
}
  0x1e   : > { %s1118_s28 = smov 128   ;;  %s1119_s29 = smov 8  }
  0x1f   : > { %945 = dma.hbm_to_vmem [thread:$0]  (!%p943_p12), %s1415_s1, 6144, %s138_s26, [#allocation3], %s1118_s28, %s1118_s28, %s1119_s29  }
  0x20   : > { %161 = sbr.rel (%p1195_p10) target bundleno = 350 (0x15e), region = 28 }
  0x25   : > { %1090 = dma.done.wait (%p953_p9), [#allocation3], 6144  }
  0x26   : > { %1092 = vsyncadd (%p953_p9), [#allocation3], 4294961152  ;;  %v1120_v0 = vmov 0.0   ;;  %vm1121_vm0 = vmmov 0   ;;  %v236_v1 = vld [vmem:[#allocation2 + $0xf8] sm:$0xff]  ;;  %v235_v3 = vld [vmem:[#allocation2 + $0xf0] sm:$0xff] }
  0x27   : > { %777 = vmatprep.subr.mxu0 %v1120_v0  ;;  %818 = vmatprep.subr.mxu1 %v1120_v0  ;;  %v218_v2 = vld [vmem:[#allocation2 + $0x78] sm:$0xff]  ;;  %v217_v4 = vld [vmem:[#allocation2 + $0x70] sm:$0xff]  ;;  %v234_v5 = vld [vmem:[#allocation2 + $0xe8] sm:$0xff]  ;;  %p190_p6 = scmp.lt.s32.totalorder %s1167_s16, 1  ;;  %vm199_vm1 = vcmask 31744   ;;  %vm241_vm2 = vcmask 1045504  }
  0x28   : > { %850 = vmatprep.mubr.msk.f32.mxu1 %vm1121_vm0, %v1120_v0  ;;  %809 = vmatprep.mubr.msk.f32.mxu0 %vm1121_vm0, %v1120_v0  ;;  %v216_v6 = vld [vmem:[#allocation2 + $0x68] sm:$0xff]  ;;  %v233_v7 = vld [vmem:[#allocation2 + $0xe0] sm:$0xff]  ;;  %v232_v9 = vld [vmem:[#allocation2 + $0xd8] sm:$0xff]  ;;  %vm429_vm3 = vcmask 1043456   ;;  %s1339_s10 = sand.u32 1, %s1107_s13   ;;  %s933_s20 = smul.u32 384, %s1167_s16 }
  0x29   : > { %778 = vmatpush3.msra.mxu0 %v236_v1  ;;  %819 = vmatpush3.msra.mxu1 %v218_v2  ;;  %v215_v8 = vld [vmem:[#allocation2 + $0x60] sm:$0xff]  ;;  %v214_v10 = vld [vmem:[#allocation2 + $0x58] sm:$0xff]  ;;  %v231_v11 = vld [vmem:[#allocation2 + $0xd0] sm:$0xff]  ;;  %s191_s5 = scalar_select %p190_p6, %s1167_s16, 1 }
  0x2a   : > { %779 = vmatprep.subr.mxu0 %v1120_v0  ;;  %820 = vmatprep.subr.mxu1 %v1120_v0  ;;  %v213_v12 = vld [vmem:[#allocation2 + $0x50] sm:$0xff]  ;;  %v230_v13 = vld [vmem:[#allocation2 + $0xc8] sm:$0xff]  ;;  %v229_v15 = vld [vmem:[#allocation2 + $0xc0] sm:$0xff]  ;;  %s932_s11 = smul.u32 24, %s1339_s10  ;;  %s1348_s26 = scalar_lea.hbm %s1416_s2, %s933_s20 }
  0x2b   : > { %780 = vmatpush3.msra.mxu0 %v235_v3  ;;  %821 = vmatpush3.msra.mxu1 %v217_v4  ;;  %v212_v14 = vld [vmem:[#allocation2 + $0x48] sm:$0xff]  ;;  %v211_v16 = vld [vmem:[#allocation2 + $0x40] sm:$0xff]  ;;  %v228_v17 = vld [vmem:[#allocation2 + $0xb8] sm:$0xff]  ;;  %s719_s6 = sshll.u32 %s191_s5, 5  ;;  %s565_s27 = scalar_lea.sflag [#allocation4], %s1339_s10 }
  0x2c   : > { %781 = vmatprep.subr.mxu0 %v1120_v0  ;;  %822 = vmatprep.subr.mxu1 %v1120_v0  ;;  %v210_v18 = vld [vmem:[#allocation2 + $0x38] sm:$0xff]  ;;  %v227_v19 = vld [vmem:[#allocation2 + $0xb0] sm:$0xff]  ;;  %s1239_s9 = scalar_lea.vmem %s1414_s0, %s719_s6  ;;  %v226_v21 = vld [vmem:[#allocation2 + $0xa8] sm:$0xff]  ;;  %s182_s17 = scalar_lea.vmem [#allocation5], %s932_s11 }
  0x2d   : > { %782 = vmatpush3.msra.mxu0 %v234_v5  ;;  %823 = vmatpush3.msra.mxu1 %v216_v6  ;;  %v209_v20 = vld [vmem:[#allocation2 + $0x30] sm:$0xff]  ;;  %v208_v22 = vld [vmem:[#allocation2 + $0x28] sm:$0xff]  ;;  %v225_v23 = vld [vmem:[#allocation2 + $0xa0] sm:$0xff]  ;;  %s583_s19 = sshll.u32 %s182_s17, 4  ;;  %s1122_s29 = smov [#allocation5]   ;;  %s1343_s19 = int_to_ptr.vmem [resolvable:$true] %s583_s19 }
  0x2e   : > { %783 = vmatprep.subr.mxu0 %v1120_v0  ;;  %824 = vmatprep.subr.mxu1 %v1120_v0  ;;  %v207_v24 = vld [vmem:[#allocation2 + $0x20] sm:$0xff]  ;;  %v1247_v26 = vld [vmem:[%s1239_s9 + $0x8] sm:$0xff]  ;;  %v224_v27 = vld [vmem:[#allocation2 + $0x98] sm:$0xff]  ;;  %s1021_s28 = scalar_lea.vmem %s1343_s19, 384  ;;  %s1025_s30 = sshll.u32 %s1122_s29, 4  ;;  %s1026_s30 = int_to_ptr.vmem [resolvable:$false] %s1025_s30 }
  0x2f   : > { %784 = vmatpush3.msra.mxu0 %v233_v7  ;;  %825 = vmatpush3.msra.mxu1 %v215_v8  ;;  %v195_v25 = vld [vmem:[%s1239_s9] sm:$0xff]  ;;  %v206_v28 = vld [vmem:[#allocation2 + $0x18] sm:$0xff]  ;;  %v1256_v30 = vsel %vm199_vm1, %v1247_v26, 0.0  ;;  %v223_v31 = vld [vmem:[#allocation2 + $0x90] sm:$0xff]  ;;  %p1022_p8 = scmp.ne.s32.totalorder %s1343_s19, %s1021_s28  ;;  %s1027_s4 = scalar_lea.vmem %s1026_s30, 768 }
  0x30   : > { %785 = vmatprep.subr.mxu0 %v1120_v0  ;;  %826 = vmatprep.subr.mxu1 %v1120_v0  ;;  %v1252_v29 = vsel %vm199_vm1, %v195_v25, 0.0  ;;  %v205_v32 = vld [vmem:[#allocation2 + $0x10] sm:$0xff]  ;;  %v222_v33 = vld [vmem:[#allocation2 + $0x88] sm:$0xff]  ;;  %v243_v36 = vrot.slane %v1256_v30, 2  ;;  %v221_v37 = vld [vmem:[#allocation2 + $0x80] sm:$0xff]  ;;  %v431_v63 = vrot.slane %v1256_v30, 4  ;;  %p1028_p11 = scmp.lt.s32.totalorder %s1343_s19, %s1026_s30  ;;  %p1029_p12 = scmp.lt.s32.totalorder %s1027_s4, %s1021_s28 }
  0x31   : > { %786 = vmatpush3.msra.mxu0 %v232_v9  ;;  %827 = vmatpush3.msra.mxu1 %v214_v10  ;;  %v204_v34 = vld [vmem:[#allocation2 + $0x8] sm:$0xff]  ;;  %v242_v35 = vrot.slane %v1252_v29, 2  ;;  %v203_v38 = vld [vmem:[#allocation2] sm:$0xff]  ;;  %v428_v40 = vld [vmem:[#allocation2 + $0x178] sm:$0xff]  ;;  %v430_v62 = vrot.slane %v1252_v29, 4  ;;  %p1023_p9 = pnand %p1022_p8, %p1184_p5 }
  0x32   : > { %787 = vmatprep.subr.mxu0 %v1120_v0  ;;  %828 = vmatprep.subr.mxu1 %v1120_v0  ;;  %v427_v41 = vld [vmem:[#allocation2 + $0x170] sm:$0xff]  ;;  %v426_v42 = vld [vmem:[#allocation2 + $0x168] sm:$0xff]  ;;  %v425_v43 = vld [vmem:[#allocation2 + $0x160] sm:$0xff]  ;;  %p1030_p13 = por %p1029_p12, %p1028_p11 }
  0x33   : > { %788 = vmatpush3.msra.mxu0 %v231_v11  ;;  %829 = vmatpush3.msra.mxu1 %v213_v12  ;;  %v244_v39 = vsel %vm241_vm2, %v242_v35, %v243_v36  ;;  %v424_v44 = vld [vmem:[#allocation2 + $0x158] sm:$0xff]  ;;  %v423_v45 = vld [vmem:[#allocation2 + $0x150] sm:$0xff]  ;;  %v422_v46 = vld [vmem:[#allocation2 + $0x148] sm:$0xff]  ;;  %v432_v4 = vsel %vm429_vm3, %v430_v62, %v431_v63  ;;  %p1024_p10 = pneg %p1023_p9 }
  0x34   : > { %789 = vmatprep.subr.mxu0 %v1120_v0  ;;  %830 = vmatprep.subr.mxu1 %v1120_v0  ;;  %v421_v47 = vld [vmem:[#allocation2 + $0x140] sm:$0xff]  ;;  %v197_v48 = vld [vmem:[%s1239_s9 + $0x10] sm:$0xff]  ;;  %v420_v49 = vld [vmem:[#allocation2 + $0x138] sm:$0xff] }
  0x35   : > { %790 = vmatpush3.msra.mxu0 %v230_v13  ;;  %831 = vmatpush3.msra.mxu1 %v212_v14  ;;  %v1290_v50 = vsel %vm199_vm1, %v197_v48, 0.0  ;;  %v419_v51 = vld [vmem:[#allocation2 + $0x130] sm:$0xff]  ;;  %v418_v52 = vld [vmem:[#allocation2 + $0x128] sm:$0xff]  ;;  %v198_v54 = vld [vmem:[%s1239_s9 + $0x18] sm:$0xf]  ;;  %p1031_p0 = pnand %p1030_p13, %p1024_p10 }
  0x36   : > { %791 = vmatprep.subr.mxu0 %v1120_v0  ;;  %832 = vmatprep.subr.mxu1 %v1120_v0  ;;  %v245_v53 = vrot.slane %v1290_v50, 2  ;;  %v417_v55 = vld [vmem:[#allocation2 + $0x120] sm:$0xff]  ;;  %v219_v56 = vsel %vm199_vm1, %v198_v54, 0.0  ;;  %v416_v58 = vld [vmem:[#allocation2 + $0x118] sm:$0xff]  ;;  %v415_v60 = vld [vmem:[#allocation2 + $0x110] sm:$0xff]  ;;  %v433_v1 = vrot.slane %v1290_v50, 4 }
  0x37   : > { %792 = vmatpush3.msra.mxu0 %v229_v15  ;;  %833 = vmatpush3.msra.mxu1 %v211_v16  ;;  %v247_v59 = vrot.slane %v219_v56, 2  ;;  %v414_v2 = vld [vmem:[#allocation2 + $0x108] sm:$0xff]  ;;  %v413_v3 = vld [vmem:[#allocation2 + $0x100] sm:$0xff]  ;;  %v435_v6 = vrot.slane %v219_v56, 4 }
  0x38   : > { %793 = vmatprep.subr.mxu0 %v1120_v0  ;;  %834 = vmatprep.subr.mxu1 %v1120_v0  ;;  %v246_v57 = vsel %vm241_vm2, %v243_v36, %v245_v53  ;;  %v434_v5 = vsel %vm429_vm3, %v431_v63, %v433_v1 }
  0x39   : > { %794 = vmatpush3.msra.mxu0 %v228_v17  ;;  %835 = vmatpush3.msra.mxu1 %v210_v18  ;;  %v248_v61 = vsel %vm241_vm2, %v245_v53, %v247_v59  ;;  %v436_v7 = vsel %vm429_vm3, %v433_v1, %v435_v6  ;;  %v523_v17 = vlaneseq }
  0x3a   : > { %795 = vmatprep.subr.mxu0 %v1120_v0  ;;  %836 = vmatprep.subr.mxu1 %v1120_v0 }
  0x3b   : > { %796 = vmatpush3.msra.mxu0 %v227_v19  ;;  %837 = vmatpush3.msra.mxu1 %v209_v20  ;;  %v524_v20 = vshrl.u32 %v523_v17, 7 }
  0x3c   : > { %797 = vmatprep.subr.mxu0 %v1120_v0  ;;  %838 = vmatprep.subr.mxu1 %v1120_v0 }
  0x3d   : > { %798 = vmatpush3.msra.mxu0 %v226_v21  ;;  %839 = vmatpush3.msra.mxu1 %v208_v22  ;;  %vm527_vm4 = vcmp.ge.s32.totalorder %v524_v20, 2 }
  0x3e   : > { %799 = vmatprep.subr.mxu0 %v1120_v0  ;;  %840 = vmatprep.subr.mxu1 %v1120_v0 }
  0x3f   : > { %800 = vmatpush3.msra.mxu0 %v225_v23  ;;  %841 = vmatpush3.msra.mxu1 %v207_v24 }
  0x40   : > { %801 = vmatprep.subr.mxu0 %v1120_v0  ;;  %842 = vmatprep.subr.mxu1 %v1120_v0 }
  0x41   : > { %802 = vmatpush3.msra.mxu0 %v224_v27  ;;  %843 = vmatpush3.msra.mxu1 %v206_v28 }
  0x42   : > { %803 = vmatprep.subr.mxu0 %v1120_v0  ;;  %844 = vmatprep.subr.mxu1 %v1120_v0 }
  0x43   : > { %804 = vmatpush3.msra.mxu0 %v223_v31  ;;  %845 = vmatpush3.msra.mxu1 %v205_v32 }
  0x44   : > { %805 = vmatprep.subr.mxu0 %v1120_v0  ;;  %846 = vmatprep.subr.mxu1 %v1120_v0 }
  0x45   : > { %806 = vmatpush3.msra.mxu0 %v222_v33  ;;  %847 = vmatpush3.msra.mxu1 %v204_v34 }
  0x46   : > { %807 = vmatprep.subr.mxu0 %v1120_v0  ;;  %848 = vmatprep.subr.mxu1 %v1120_v0 }
  0x47   : > { %808 = vmatpush3.msra.mxu0 %v221_v37  ;;  %849 = vmatpush3.msra.mxu1 %v203_v38 }
  0x48   : > { %851 = vmatmul.mubr.msk.f32.vlgmr.msra.gmra.mxu1 %vm199_vm1, %v195_v25  ;;  %859 = vmatprep.subr.mxu0 %v1120_v0  ;;  %v526_v25 = vadd.s32 16, %v524_v20 }
  0x49   : > { %900 = vmatprep.subr.mxu1 %v1120_v0  ;;  %810 = vmatmul.mubr.f32.vlgmr.msra.gmra.mxu0 %v244_v39 }
  0x4a   : > { %860 = vmatpush3.msra.mxu0 %v428_v40  ;;  %916 = vmatpush3.msra.mxu1 %v428_v40  ;;  %vm532_vm5 = vcmp.lt.s32.totalorder %v526_v25, 18 }
  0x4b   : > { %861 = vmatprep.subr.mxu0 %v1120_v0  ;;  %901 = vmatprep.subr.mxu1 %v1120_v0 }
  0x4c   : > { %862 = vmatpush3.msra.mxu0 %v427_v41  ;;  %917 = vmatpush3.msra.mxu1 %v427_v41 }
  0x4d   : > { %863 = vmatprep.subr.mxu0 %v1120_v0  ;;  %902 = vmatprep.subr.mxu1 %v1120_v0 }
  0x4e   : > { %864 = vmatpush3.msra.mxu0 %v426_v42  ;;  %918 = vmatpush3.msra.mxu1 %v426_v42 }
  0x4f   : > { %865 = vmatprep.subr.mxu0 %v1120_v0  ;;  %903 = vmatprep.subr.mxu1 %v1120_v0 }
  0x50   : > { %866 = vmatpush3.msra.mxu0 %v425_v43  ;;  %919 = vmatpush3.msra.mxu1 %v425_v43 }
  0x51   : > { %867 = vmatprep.subr.mxu0 %v1120_v0  ;;  %904 = vmatprep.subr.mxu1 %v1120_v0 }
  0x52   : > { %868 = vmatpush3.msra.mxu0 %v424_v44  ;;  %920 = vmatpush3.msra.mxu1 %v424_v44 }
  0x53   : > { %869 = vmatprep.subr.mxu0 %v1120_v0  ;;  %905 = vmatprep.subr.mxu1 %v1120_v0 }
  0x54   : > { %870 = vmatpush3.msra.mxu0 %v423_v45  ;;  %921 = vmatpush3.msra.mxu1 %v423_v45 }
  0x55   : > { %871 = vmatprep.subr.mxu0 %v1120_v0  ;;  %906 = vmatprep.subr.mxu1 %v1120_v0 }
  0x56   : > { %872 = vmatpush3.msra.mxu0 %v422_v46  ;;  %922 = vmatpush3.msra.mxu1 %v422_v46 }
  0x57   : > { %873 = vmatprep.subr.mxu0 %v1120_v0  ;;  %907 = vmatprep.subr.mxu1 %v1120_v0 }
  0x58   : > { %874 = vmatpush3.msra.mxu0 %v421_v47  ;;  %923 = vmatpush3.msra.mxu1 %v421_v47 }
  0x59   : > { %875 = vmatprep.subr.mxu0 %v1120_v0  ;;  %908 = vmatprep.subr.mxu1 %v1120_v0 }
  0x5a   : > { %876 = vmatpush3.msra.mxu0 %v420_v49  ;;  %924 = vmatpush3.msra.mxu1 %v420_v49 }
  0x5b   : > { %877 = vmatprep.subr.mxu0 %v1120_v0  ;;  %909 = vmatprep.subr.mxu1 %v1120_v0 }
  0x5c   : > { %878 = vmatpush3.msra.mxu0 %v419_v51  ;;  %925 = vmatpush3.msra.mxu1 %v419_v51 }
  0x5d   : > { %879 = vmatprep.subr.mxu0 %v1120_v0  ;;  %910 = vmatprep.subr.mxu1 %v1120_v0 }
  0x5e   : > { %853 = vmatprep.mubr.msk.f32.mxu1 %vm1121_vm0, %v1120_v0  ;;  %880 = vmatpush3.msra.mxu0 %v418_v52 }
  0x5f   : > { %926 = vmatpush3.msra.mxu1 %v418_v52  ;;  %881 = vmatprep.subr.mxu0 %v1120_v0 }
  0x60   : > { %854 = vmatmul.mubr.msk.f32.gmra.mxu1 %vm199_vm1, %v1247_v26  ;;  %911 = vmatprep.subr.mxu1 %v1120_v0 }
  0x61   : > { %812 = vmatprep.mubr.msk.f32.mxu0 %vm1121_vm0, %v1120_v0  ;;  %882 = vmatpush3.msra.mxu0 %v417_v55 }
  0x62   : > { %927 = vmatpush3.msra.mxu1 %v417_v55  ;;  %813 = vmatmul.mubr.f32.gmra.mxu0 %v246_v57 }
  0x63   : > { %883 = vmatprep.subr.mxu0 %v1120_v0  ;;  %912 = vmatprep.subr.mxu1 %v1120_v0 }
  0x64   : > { %856 = vmatprep.mubr.msk.f32.mxu1 %vm1121_vm0, %v1120_v0  ;;  %884 = vmatpush3.msra.mxu0 %v416_v58 }
  0x65   : > { %928 = vmatpush3.msra.mxu1 %v416_v58  ;;  %885 = vmatprep.subr.mxu0 %v1120_v0 }
  0x66   : > { %857 = vmatmul.mubr.msk.f32.gmra.mxu1 %vm199_vm1, %v197_v48  ;;  %913 = vmatprep.subr.mxu1 %v1120_v0 }
  0x67   : > { %815 = vmatprep.mubr.msk.f32.mxu0 %vm1121_vm0, %v1120_v0  ;;  %886 = vmatpush3.msra.mxu0 %v415_v60 }
  0x68   : > { %929 = vmatpush3.msra.mxu1 %v415_v60  ;;  %816 = vmatmul.mubr.f32.gmra.mxu0 %v248_v61 }
  0x69   : > { %887 = vmatprep.subr.mxu0 %v1120_v0  ;;  %914 = vmatprep.subr.mxu1 %v1120_v0 }
  0x6a   : > { %888 = vmatpush3.msra.mxu0 %v414_v2  ;;  %930 = vmatpush3.msra.mxu1 %v414_v2 }
  0x6b   : > { %889 = vmatprep.subr.mxu0 %v1120_v0  ;;  %915 = vmatprep.subr.mxu1 %v1120_v0 }
  0x6c   : > { %890 = vmatpush3.msra.mxu0 %v413_v3  ;;  %931 = vmatpush3.msra.mxu1 %v413_v3 }
  0x6d   : > { %891 = vmatprep.mubr.msk.f32.mxu0 %vm1121_vm0, %v1120_v0  ;;  %894 = vmatprep.mubr.msk.f32.mxu1 %vm1121_vm0, %v1120_v0 }
  0x6e   : > { %892 = vmatmul.mubr.f32.vlgmr.msra.gmra.mxu0 %v432_v4  ;;  %895 = vmatmul.mubr.f32.vlgmr.msra.gmra.mxu1 %v434_v5 }
  0x6f   : > { %897 = vmatprep.mubr.msk.f32.mxu1 %vm1121_vm0, %v1120_v0 }
  0x72   : > { %898 = vmatmul.mubr.f32.gmra.mxu1 %v436_v7 }
 0x108   : > { %v398_v8 = vpop.f32.mrf.mxu1 }
 0x109   : > { %v318_v9 = vpop.f32.mrf.mxu0 }
 0x10a   : > { %v852_v10 = vpop.f32.mrf.mxu1  ;;  %v399_v21 = vadd.f32 %v398_v8, %v318_v9 }
 0x10b   : > { %v811_v11 = vpop.f32.mrf.mxu0 }
 0x120   : > { %v403_v12 = vpop.f32.mrf.mxu1 }
 0x122   : > { %v323_v13 = vpop.f32.mrf.mxu0  ;;  %v855_v14 = vpop.f32.mrf.mxu1 }
 0x123   : > { %v404_v22 = vadd.f32 %v403_v12, %v323_v13 }
 0x124   : > { %v814_v15 = vpop.f32.mrf.mxu0 }
 0x126   : > { %v408_v16 = vpop.f32.mrf.mxu1 }
 0x128   : > { %v328_v18 = vpop.f32.mrf.mxu0  ;;  %v858_v19 = vpop.f32.mrf.mxu1 }
 0x129   : > { %v409_v30 = vadd.f32 %v408_v16, %v328_v18 }
 0x12a   : > { %v817_v0 = vpop.f32.mrf.mxu0 }
 0x12e   : > { %v506_v23 = vpop.f32.mrf.mxu0  ;;  %v511_v24 = vpop.f32.mrf.mxu1 }
 0x12f   : > { %v520_v26 = vadd.f32 %v506_v23, %v399_v21  ;;  %v521_v27 = vadd.f32 %v511_v24, %v404_v22 }
 0x130   : > { %v893_v28 = vpop.f32.mrf.mxu0  ;;  %v896_v29 = vpop.f32.mrf.mxu1 }
 0x131   : > { %v536_v31 = vsel %vm527_vm4, %v520_v26, 0.0  ;;  %540 = vst [vmem:[%s182_s17 + $0x8] sm:$0xff] %v521_v27  ;;  %v551_v33 = vmul.f32 %v521_v27, %v521_v27 }
 0x132   : > { %539 = vst [vmem:[%s182_s17] sm:$0xff] %v536_v31  ;;  %v550_v32 = vmul.f32 %v536_v31, %v536_v31  ;;  %v516_v34 = vpop.f32.mrf.mxu1  ;;  %v542_v36 = vadd.f32 %v536_v31, %v521_v27 }
 0x133   : > { %v522_v35 = vadd.f32 %v516_v34, %v409_v30 }
 0x134   : > { %v899_v37 = vpop.f32.mrf.mxu1  ;;  %v553_v39 = vadd.f32 %v551_v33, %v550_v32 }
 0x135   : > { %v538_v38 = vsel %vm532_vm5, %v522_v35, 0.0 }
 0x136   : > { %541 = vst [vmem:[%s182_s17 + $0x10] sm:$0xff] %v538_v38  ;;  %v543_v40 = vadd.f32 %v542_v36, %v538_v38  ;;  %v552_v41 = vmul.f32 %v538_v38, %v538_v38 }
 0x137   : > { %1034 = shalt.err (!%p1031_p0)
}
 0x138   : > { %s1035_s5 = scalar_lea.hbm %s1348_s26, 384  ;;  %s1039_s8 = scalar_lea.hbm %s1416_s2, 768 }
 0x139   : > { %p1036_p1 = scmp.ne.s32.totalorder %s1348_s26, %s1035_s5  ;;  %p1040_p4 = scmp.lt.s32.totalorder %s1348_s26, %s1416_s2 }
 0x13a   : > { %p1041_p7 = scmp.lt.s32.totalorder %s1039_s8, %s1035_s5 }
 0x13b   : > { %p1037_p2 = pnand %p1036_p1, %p1184_p5 }
 0x13c   : > { %p1042_p6 = por %p1041_p7, %p1040_p4 }
 0x13d   : > { %p1038_p3 = pneg %p1037_p2 }
 0x13f   : > { %p1043_p8 = pnand %p1042_p6, %p1038_p3 }
 0x141   : > { %1046 = shalt.err (!%p1043_p8)
}
 0x142   : > { %s1123_s17 = smov 128   ;;  %s1124_s20 = smov 8   ;;  %v544_v42 = vrot.slane %v543_v40, 4  ;;  %v554_v43 = vadd.f32 %v553_v39, %v552_v41  ;;  %vm561_vm6 = vcmask 1040384  }
 0x143   : > { %938 = dma.vmem_to_hbm [thread:$0]  (%p1184_p5), %s1343_s19, 384, %s1348_s26, %s565_s27, %s1123_s17, %s1123_s17, %s1124_s20  }
 0x144   : > { %v545_v44 = vadd.f32 %v544_v42, %v543_v40  ;;  %v555_v45 = vrot.slane %v554_v43, 4  ;;  %s708_s24 = sshll.u32 %s1339_s10, 1  ;;  %s716_s25 = sshll.u32 %s1167_s16, 5 }
 0x145   : > { %s189_s28 = scalar_lea.vmem [#allocation6], %s708_s24  ;;  %s1378_s27 = scalar_lea.hbm %s1417_s3, %s716_s25 }
 0x146   : > { %v546_v46 = vrot.slane %v545_v44, 2  ;;  %v556_v47 = vadd.f32 %v555_v45, %v554_v43  ;;  %s599_s29 = sshll.u32 %s189_s28, 4  ;;  %s570_s30 = scalar_lea.sflag [#allocation7], %s1339_s10  ;;  %s600_s29 = int_to_ptr.vmem [resolvable:$true] %s599_s29 }
 0x147   : > { %s1047_s4 = scalar_lea.vmem %s600_s29, 32  ;;  %s1125_s16 = smov [#allocation6]  }
 0x148   : > { %v547_v48 = vadd.f32 %v546_v46, %v545_v44  ;;  %v557_v49 = vrot.slane %v556_v47, 2  ;;  %p1048_p9 = scmp.ne.s32.totalorder %s600_s29, %s1047_s4  ;;  %s1051_s5 = sshll.u32 %s1125_s16, 4  ;;  %s1052_s5 = int_to_ptr.vmem [resolvable:$false] %s1051_s5 }
 0x149   : > { %s1053_s6 = scalar_lea.vmem %s1052_s5, 64  ;;  %p1054_p12 = scmp.lt.s32.totalorder %s600_s29, %s1052_s5 }
 0x14a   : > { %v548_v50 = vrot.slane %v547_v48, 1  ;;  %v558_v51 = vadd.f32 %v557_v49, %v556_v47  ;;  %p1049_p10 = pnand %p1048_p9, %p1184_p5  ;;  %p1055_p13 = scmp.lt.s32.totalorder %s1053_s6, %s1047_s4 }
 0x14c   : > { %v559_v52 = vrot.slane %v558_v51, 1  ;;  %v549_v53 = vadd.f32 %v548_v50, %v547_v48  ;;  %p1050_p11 = pneg %p1049_p10  ;;  %p1056_p0 = por %p1055_p13, %p1054_p12 }
 0x14e   : > { %v560_v54 = vadd.f32 %v559_v52, %v558_v51  ;;  %p1057_p1 = pnand %p1056_p0, %p1050_p11 }
 0x150   : > { %v562_v55 = vsel %vm561_vm6, %v549_v53, %v560_v54 }
 0x151   : > { %563 = vst [vmem:[%s189_s28] sm:$0x3] %v562_v55 }
 0x152   : > { %1060 = shalt.err (!%p1057_p1)
}
 0x153   : > { %s1061_s7 = scalar_lea.hbm %s1378_s27, 32  ;;  %s1065_s9 = scalar_lea.hbm %s1417_s3, 64 }
 0x154   : > { %p1062_p2 = scmp.ne.s32.totalorder %s1378_s27, %s1061_s7  ;;  %p1066_p7 = scmp.lt.s32.totalorder %s1378_s27, %s1417_s3 }
 0x155   : > { %p1067_p6 = scmp.lt.s32.totalorder %s1065_s9, %s1061_s7 }
 0x156   : > { %p1063_p3 = pnand %p1062_p2, %p1184_p5 }
 0x157   : > { %p1068_p8 = por %p1067_p6, %p1066_p7 }
 0x158   : > { %p1064_p4 = pneg %p1063_p3 }
 0x15a   : > { %p1069_p9 = pnand %p1068_p8, %p1064_p4 }
 0x15c   : > { %1072 = shalt.err (!%p1069_p9)
}
 0x15d   : > { %939 = dma.vmem_to_hbm [thread:$0]  (%p1184_p5), %s600_s29, 32, %s1378_s27, %s570_s30  }
 0x15e PF: > { %p955_p10 = scmp.ge.s32.totalorder %s1115_s15, 2  ;;  %s611_s20 = sand.u32 1, %s1103_s12  }
 0x15f   : > { %p1421_p11 = scmp.ne.s32.totalorder %s1419_s23, 0  ;;  %s612_s24 = scalar_lea.sflag [#allocation4], %s611_s20 }
 0x161   : > { %p947_p12 = pnand %p955_p10, %p1421_p11 }
 0x163   : > { %p948_p13 = pneg %p947_p12 }
 0x165   : > { %1094 = dma.done.wait (%p948_p13), %s612_s24, 384  }
 0x166   : > { %1096 = vsyncadd (%p948_p13), %s612_s24, 4294966912  ;;  %s621_s25 = scalar_lea.sflag [#allocation7], %s611_s20 }
 0x167   : > { %1098 = dma.done.wait (%p948_p13), %s621_s25, 32  }
 0x168   : > { %1100 = vsyncadd (%p948_p13), %s621_s25, 4294967264  ;;  %p18_p5 = scmp.ge.s32.totalorder %s1171_s18, 4   ;;  %s1422_s12 = smov %s1107_s13 }
 0x169   : > { %s1423_s13 = smov %s1111_s14  ;;  %s1424_s14 = smov %s1182_s21 }
 0x16a   : > { %s1425_s15 = smov %s1171_s18  ;;  %20 = sbr.rel (!%p18_p5) target bundleno = 6 (0x6), region = 87 }
 0x16f   :  { %626 = vsyncpa [#allocation3], 1 }
 0x170   :  { %628 = vsyncpa [#allocation3 + $0x1], 1 }
 0x171   :  { %629 = vsyncpa [#allocation4], 1 }
 0x172   :  { %631 = vsyncpa [#allocation4 + $0x1], 1 }
 0x173   :  { %632 = vsyncpa [#allocation7], 1 }
 0x174   :  { %634 = vsyncpa [#allocation7 + $0x1], 1 }

</bundles_post_ra>
